<compile_context>
chip_gen: v6e
topology: v6e:2x2x1
jax: 0.10.0
libtpu: 0.0.40
codegen_flags: <defaults>
</compile_context>

<pallas_src>
import functools

import numpy as np
import jax
import jax.numpy as jnp
from jax.experimental import pallas as pl
from jax.experimental.pallas import tpu as pltpu


def _round_up(x, m):
    return (x + m - 1) // m * m


# ----------------------------------------------------------------------------
# Generation-aware configuration (VMEM request + classifier tile caps).
# ----------------------------------------------------------------------------
def _tpu_config():
    try:
        phys = int(pltpu.get_tpu_info().vmem_capacity_bytes)
    except Exception:
        phys = 64 * 1024 * 1024
    if phys >= 100 * 1024 * 1024:
        # v5e / v6e: 128 MiB physical VMEM, single TensorCore.
        return {"vmem_limit": 96 * 1024 * 1024, "tn_cap": 2048,
                "tk_cap": 4096, "ensure_two_j": False}
    # v7x (64 MiB per TC, 2 TCs) or unknown: conservative tiles and make sure
    # every classifier matmul has >=2 parallel output blocks.
    return {"vmem_limit": 48 * 1024 * 1024, "tn_cap": 1024,
            "tk_cap": 2048, "ensure_two_j": True}


_CFG = _tpu_config()

# VGG19 ('E') feature config.
CFG_E = [64, 64, "M", 128, 128, "M", 256, 256, 256, 256, "M",
         512, 512, 512, 512, "M", 512, 512, 512, 512, "M"]


# ----------------------------------------------------------------------------
# Conv 3x3 (padding=1, stride=1) + bias + ReLU as a single deep matmul.
# ----------------------------------------------------------------------------
def _conv_mm_kernel(x_ref, w_ref, b_ref, o_ref):
    # One K = 9*Cin MXU matmul per row tile; bias + ReLU fused into the store.
    acc = jnp.dot(x_ref[0], w_ref[...], preferred_element_type=jnp.float32)
    o_ref[0] = jnp.maximum(acc + b_ref[...], 0.0).astype(o_ref.dtype)


def _pick_conv_rows(rows, k_depth):
    # Block == full row axis when small (always legal); otherwise a multiple of
    # 8 that divides `rows` and keeps the bf16 input block around <= 2 MB.
    if rows <= 512:
        return rows
    cap = (2 * 1024 * 1024) // (k_depth * 2)
    cap = max(8, min(512, (cap // 8) * 8))
    for t in range(cap, 7, -8):
        if rows % t == 0:
            return t
    return rows


def conv3x3_bias_relu(x, w_kc, b2):
    """x: (N,H,W,Cp) bf16, w_kc: (9*Cp, Coutp) bf16, b2: (1, Coutp) f32."""
    N, H, W, Cp = x.shape
    K = 9 * Cp
    Coutp = w_kc.shape[1]

    # im2col slab in glue: 9 shifted views concatenated on the channel axis
    # (dy-major, dx, cin) — matches w.reshape(9*Cin, Cout) ordering.
    xp = jnp.pad(x, ((0, 0), (1, 1), (1, 1), (0, 0)))
    cols = [xp[:, dy:dy + H, dx:dx + W, :]
            for dy in range(3) for dx in range(3)]
    xin = jnp.concatenate(cols, axis=-1).reshape(N, H * W, K)

    rows = H * W
    TR = _pick_conv_rows(rows, K)
    nr = rows // TR

    out = pl.pallas_call(
        _conv_mm_kernel,
        out_shape=jax.ShapeDtypeStruct((N, rows, Coutp), jnp.bfloat16),
        grid_spec=pltpu.PrefetchScalarGridSpec(
            num_scalar_prefetch=0,
            grid=(N, nr),
            in_specs=[
                pl.BlockSpec((1, TR, K), lambda n, r: (n, r, 0)),
                pl.BlockSpec((K, Coutp), lambda n, r: (0, 0)),
                pl.BlockSpec((1, Coutp), lambda n, r: (0, 0)),
            ],
            out_specs=pl.BlockSpec((1, TR, Coutp), lambda n, r: (n, r, 0)),
        ),
        compiler_params=pltpu.CompilerParams(
            dimension_semantics=("parallel", "parallel"),
            vmem_limit_bytes=_CFG["vmem_limit"],
        ),
    )(xin, w_kc, b2)
    return out.reshape(N, H, W, Coutp)


# ----------------------------------------------------------------------------
# Linear (x @ W + b), optional fused ReLU, K-tiled Pallas matmul.
# ----------------------------------------------------------------------------
def _pick_tile_m(M, cap=256):
    if M <= cap:
        return M
    for t in range(cap, 7, -8):
        if M % t == 0:
            return t
    return M


def _pick_tile_k(K, cap):
    if K <= cap:
        return K
    t = (min(cap, K) // 128) * 128
    while t > 128 and K % t:
        t -= 128
    return t if (t >= 128 and K % t == 0) else K


def _pick_tile_n(Np, cap, ensure_two):
    cands = [c for c in (4096, 2048, 1024, 512, 256, 128)
             if c <= cap and c <= Np and Np % c == 0]
    if not cands:
        return Np
    tn = cands[0]
    if ensure_two and Np // tn < 2:
        for c in cands:
            if Np // c >= 2:
                tn = c
                break
    return tn


def _linear_kernel(x_ref, w_ref, b_ref, o_ref, *, apply_relu):
    k = pl.program_id(2)
    contrib = jnp.dot(x_ref[...], w_ref[...],
                      preferred_element_type=jnp.float32)

    @pl.when(k == 0)
    def _():
        o_ref[...] = contrib            # write first k directly; no zero-init

    @pl.when(k > 0)
    def _():
        o_ref[...] += contrib

    @pl.when(k == pl.num_programs(2) - 1)
    def _():
        y = o_ref[...] + b_ref[...]
        if apply_relu:
            y = jnp.maximum(y, 0.0)
        o_ref[...] = y


def linear(x, w, b2, apply_relu):
    """x: (M,K) float, w: (K,Np) bf16 (Np % 128 == 0), b2: (1,Np) f32."""
    x = x.astype(jnp.bfloat16)          # cast once here, not per k-step
    M, K = x.shape
    Np = w.shape[1]
    tm = _pick_tile_m(M)
    tk = _pick_tile_k(K, _CFG["tk_cap"])
    tn = _pick_tile_n(Np, _CFG["tn_cap"], _CFG["ensure_two_j"])

    return pl.pallas_call(
        functools.partial(_linear_kernel, apply_relu=apply_relu),
        out_shape=jax.ShapeDtypeStruct((M, Np), jnp.float32),
        grid_spec=pltpu.PrefetchScalarGridSpec(
            num_scalar_prefetch=0,
            grid=(M // tm, Np // tn, K // tk),
            in_specs=[
                pl.BlockSpec((tm, tk), lambda i, j, k: (i, k)),
                pl.BlockSpec((tk, tn), lambda i, j, k: (k, j)),
                pl.BlockSpec((1, tn), lambda i, j, k: (0, j)),
            ],
            out_specs=pl.BlockSpec((tm, tn), lambda i, j, k: (i, j)),
        ),
        compiler_params=pltpu.CompilerParams(
            dimension_semantics=("parallel", "parallel", "arbitrary"),
            vmem_limit_bytes=_CFG["vmem_limit"],
        ),
    )(x, w, b2)


# ----------------------------------------------------------------------------
# Glue ops (pure JAX): maxpool 2x2 and adaptive avg pool (general path only).
# ----------------------------------------------------------------------------
def maxpool2x2(x):
    N, H, W, C = x.shape
    return jnp.max(x.reshape(N, H // 2, 2, W // 2, 2, C), axis=(2, 4))


def _adaptive_matrix(in_size, out_size):
    m = np.zeros((out_size, in_size), np.float32)
    for i in range(out_size):
        s = (i * in_size) // out_size
        e = -((-(i + 1) * in_size) // out_size)  # ceil
        m[i, s:e] = 1.0 / (e - s)
    return jnp.asarray(m)


def adaptive_avg_pool(x, oh, ow):
    Ph = _adaptive_matrix(x.shape[1], oh)
    Pw = _adaptive_matrix(x.shape[2], ow)
    y = jnp.einsum("oh,nhwc->nowc", Ph, x)
    return jnp.einsum("pw,nowc->nopc", Pw, y)


# ----------------------------------------------------------------------------
# Parameter init (deterministic, matches module __init__ shapes).
# ----------------------------------------------------------------------------
def init_params(key, num_classes=1000):
    params = {"features": [], "num_classes": num_classes}
    cin, cin_p = 3, 3
    idx = 0
    for v in CFG_E:
        if v == "M":
            params["features"].append(("pool", None))
            continue
        cout = v
        cout_p = max(128, _round_up(cout, 128))   # lane-dense output stores
        k = jax.random.fold_in(key, idx)
        idx += 1
        std = float(np.sqrt(2.0 / (cout * 9)))    # kaiming_normal_ fan_out/relu
        w = jax.random.normal(k, (3, 3, cin, cout), jnp.float32) * std
        # Pad in/out channels with zeros; padded activations stay exactly 0.
        w_p = jnp.zeros((3, 3, cin_p, cout_p), jnp.float32)
        w_p = w_p.at[:, :, :cin, :cout].set(w)
        w_kc = w_p.reshape(9 * cin_p, cout_p).astype(jnp.bfloat16)
        b2 = jnp.zeros((1, cout_p), jnp.float32)  # conv bias init is 0
        params["features"].append(("conv", (w_kc, b2)))
        cin, cin_p = cout, cout_p
    # NOTE: config 'E' ends at 512 channels == padded width, so the classifier
    # interface sees exactly the real 512 channels.

    def lin(k, din, dout):
        dout_p = _round_up(dout, 128)             # lane-dense (fc3: 1000->1024)
        w = jax.random.normal(k, (din, dout), jnp.float32) * 0.01
        if dout_p != dout:
            w = jnp.pad(w, ((0, 0), (0, dout_p - dout)))
        return w, jnp.zeros((1, dout_p), jnp.float32)

    w1, b1 = lin(jax.random.fold_in(key, 1000), 512 * 7 * 7, 4096)
    # Fold the 1x1 -> 7x7 adaptive-avg-pool replication + NCHW flatten into
    # fc1: W_fold[c,:] = sum_p W[c*49+p,:].  Only used when the pre-avgpool
    # feature map is 1x1 (checked in the forward pass).
    w1_fold = w1.reshape(512, 49, 4096).sum(axis=1)
    params["fc1"] = (w1.astype(jnp.bfloat16), b1)
    params["fc1_fold"] = (w1_fold.astype(jnp.bfloat16), b1)

    w2, b2 = lin(jax.random.fold_in(key, 1001), 4096, 4096)
    params["fc2"] = (w2.astype(jnp.bfloat16), b2)
    w3, b3 = lin(jax.random.fold_in(key, 1002), 4096, num_classes)
    params["fc3"] = (w3.astype(jnp.bfloat16), b3)
    return params


# ----------------------------------------------------------------------------
# Full VGG_MP forward.
# ----------------------------------------------------------------------------
def vgg_mp_forward(params, x_nchw):
    # NCHW (PyTorch) -> NHWC bf16 (kernel layout)
    x = jnp.transpose(x_nchw, (0, 2, 3, 1)).astype(jnp.bfloat16)

    # features: conv3x3+ReLU / maxpool stack
    for kind, p in params["features"]:
        if kind == "conv":
            x = conv3x3_bias_relu(x, *p)
        else:
            x = maxpool2x2(x)

    N, H, W, C = x.shape
    if H == 1 and W == 1:
        # Adaptive avg pool 1x1 -> 7x7 is pure replication; use the folded fc1.
        feat = x.reshape(N, C)
        y = linear(feat, *params["fc1_fold"], apply_relu=True)
    else:
        xf = adaptive_avg_pool(x.astype(jnp.float32), 7, 7)
        xf = jnp.transpose(xf, (0, 3, 1, 2)).reshape(N, -1)  # NCHW flatten
        y = linear(xf, *params["fc1"], apply_relu=True)

    # classifier: ColumnParallelLinear -> ReLU -> Dropout -> RowParallelLinear
    #             -> ReLU -> Dropout, then final nn.Linear(4096, num_classes).
    # TODO(synk): nn.Dropout is stochastic in training; eval-mode identity here.
    y = linear(y, *params["fc2"], apply_relu=True)
    y = linear(y, *params["fc3"], apply_relu=False)

    nc = params["num_classes"]
    return y[:, :nc] if y.shape[1] != nc else y


if __name__ == "__main__":
    num_classes = 1000
    # NCHW, 3 channels, 32x32 spatial (survives the 5 maxpools -> 1x1 feature
    # map, which exercises the fc1 avgpool-fold fast path).
    x = jax.random.normal(jax.random.PRNGKey(0), (2, 3, 32, 32), jnp.float32)

    params = init_params(jax.random.PRNGKey(42), num_classes=num_classes)

    out = vgg_mp_forward(params, x)
    out = jax.block_until_ready(out)

    assert out.shape == (2, num_classes), out.shape
    assert out.dtype == jnp.float32
    assert bool(jnp.all(jnp.isfinite(out)))
    print("KERNEL_OK")
</pallas_src>

<mosaic_0001>
module attributes {stable_mosaic.version = 11 : i64} {
  func.func @_conv_mm_kernel(%arg0: i32, %arg1: i32, %arg2: memref<1x512x27xbf16, #tpu.memory_space<vmem>>, %arg3: memref<27x128xbf16, #tpu.memory_space<vmem>>, %arg4: memref<1x128xf32, #tpu.memory_space<vmem>>, %arg5: memref<1x512x128xbf16, #tpu.memory_space<vmem>>) attributes {dimension_semantics = [#tpu.dimension_semantics<parallel>, #tpu.dimension_semantics<parallel>], iteration_bounds = array<i64: 2, 2>, scalar_prefetch = 0 : i64, scratch_operands = 0 : i64, tpu.core_type = #tpu.core_type<tc>, window_params = [{transform_indices = @transform_0, window_bounds = array<i64: 1, 512, 27>}, {pipeline_mode = #tpu.pipeline_mode<synchronous>, transform_indices = @transform_1, window_bounds = array<i64: 27, 128>}, {pipeline_mode = #tpu.pipeline_mode<synchronous>, transform_indices = @transform_2, window_bounds = array<i64: 1, 128>}, {transform_indices = @transform_3, window_bounds = array<i64: 1, 512, 128>}]} {
    %c0 = arith.constant 0 : index
    %c0_0 = arith.constant 0 : index
    %c0_1 = arith.constant 0 : index
    %0 = vector.load %arg2[%c0, %c0_0, %c0_1] : memref<1x512x27xbf16, #tpu.memory_space<vmem>>, vector<1x512x27xbf16>
    %1 = vector.shape_cast %0 : vector<1x512x27xbf16> to vector<512x27xbf16>
    %c0_2 = arith.constant 0 : index
    %c0_3 = arith.constant 0 : index
    %2 = vector.load %arg3[%c0_2, %c0_3] : memref<27x128xbf16, #tpu.memory_space<vmem>>, vector<27x128xbf16>
    %cst = arith.constant dense<0.000000e+00> : vector<512x128xf32>
    %3 = tpu.matmul %1, %2, %cst {dimension_numbers = #tpu.dot_dimension_numbers<[1], [0], [0], [1], [0, 0, 1, 1], [], []>} : vector<512x27xbf16>, vector<27x128xbf16>, vector<512x128xf32> -> vector<512x128xf32>
    %c0_4 = arith.constant 0 : index
    %c0_5 = arith.constant 0 : index
    %4 = vector.load %arg4[%c0_4, %c0_5] : memref<1x128xf32, #tpu.memory_space<vmem>>, vector<1x128xf32>
    %5 = vector.broadcast %4 : vector<1x128xf32> to vector<512x128xf32>
    %6 = arith.addf %3, %5 : vector<512x128xf32>
    %cst_6 = arith.constant 0.000000e+00 : f32
    %7 = vector.broadcast %cst_6 : f32 to vector<512x128xf32>
    %8 = arith.maximumf %6, %7 : vector<512x128xf32>
    %9 = arith.truncf %8 : vector<512x128xf32> to vector<512x128xbf16>
    %c0_7 = arith.constant 0 : index
    %c0_8 = arith.constant 0 : index
    %c0_9 = arith.constant 0 : index
    %10 = vector.load %arg5[%c0_7, %c0_8, %c0_9] : memref<1x512x128xbf16, #tpu.memory_space<vmem>>, vector<1x512x128xbf16>
    %11 = vector.shape_cast %10 : vector<1x512x128xbf16> to vector<512x128xbf16>
    %12 = vector.shape_cast %9 : vector<512x128xbf16> to vector<1x512x128xbf16>
    tpu.vector_store %arg5[%c0_7, %c0_8, %c0_9], %12 {strides = array<i32>} : memref<1x512x128xbf16, #tpu.memory_space<vmem>>, vector<1x512x128xbf16>,
    return
  }
  func.func @transform_0(%arg0: i32, %arg1: i32) -> (i32, i32, i32) {
    %c0_i32 = arith.constant 0 : i32
    %c0_i32_0 = arith.constant 0 : i32
    return %arg0, %arg1, %c0_i32 : i32, i32, i32
  }
  func.func @transform_1(%arg0: i32, %arg1: i32) -> (i32, i32) {
    %c0_i32 = arith.constant 0 : i32
    %c0_i32_0 = arith.constant 0 : i32
    %c0_i32_1 = arith.constant 0 : i32
    return %c0_i32, %c0_i32_0 : i32, i32
  }
  func.func @transform_2(%arg0: i32, %arg1: i32) -> (i32, i32) {
    %c0_i32 = arith.constant 0 : i32
    %c0_i32_0 = arith.constant 0 : i32
    %c0_i32_1 = arith.constant 0 : i32
    return %c0_i32, %c0_i32_0 : i32, i32
  }
  func.func @transform_3(%arg0: i32, %arg1: i32) -> (i32, i32, i32) {
    %c0_i32 = arith.constant 0 : i32
    %c0_i32_0 = arith.constant 0 : i32
    return %arg0, %arg1, %c0_i32 : i32, i32, i32
  }
}

</mosaic_0001>

<bundles_post_ra>
// kernel: tpu_custom_call.1
= control target key start
LH: loop header
LB: loop body
LE: loop exit
PB: predicated region body
PF: predicated region fallthrough
CT: control target
= control target key end

     0   :  { %8 = vsyncpa [#allocation3], 0  ;;  %s2377_s0 = inlined_call_operand.vmem [shape: bf16[2,1024,27], index: 0, kind: input, shape index: {}]   ;;  %s2378_s1 = inlined_call_operand.vmem [shape: bf16[27,128], index: 1, kind: input, shape index: {}]   ;;  %s2379_s2 = inlined_call_operand.vmem [shape: f32[1,128], index: 2, kind: input, shape index: {}]   ;;  %s2380_s3 = inlined_call_operand.hbm [shape: bf16[2,1024,128], index: 3, kind: output, shape index: {}]  }
   0x1   :  { %10 = vsyncpa [#allocation3 + $0x1], 0  ;;  %s2055_s12 = smov 0   ;;  %s2057_s13 = smov 0  }
   0x2   :  { %s2059_s14 = smov 0   ;;  %s2061_s15 = smov 0  }
   0x3   :  { %s2063_s16 = smov 0   ;;  %s2065_s17 = smov 0  }
   0x4   :  { %s2067_s18 = smov 0   ;;  %s2069_s19 = smov 0  }
   0x5 LB: > { %s1322_s20 = sadd.s32 4294967295, %s2029_s19   ;;  %s1323_s21 = sadd.s32 4294967294, %s2029_s19   ;;  %s2029_s19 = sphi %s2069_s19, %s16_s19   ;;  %s2025_s18 = sphi %s2067_s18, %s2389_s18   ;;  %s2021_s17 = sphi %s2065_s17, %s2388_s17   ;;  %s2017_s16 = sphi %s2063_s16, %s2387_s16   ;;  %s2013_s15 = sphi %s2061_s15, %s2386_s15   ;;  %s2009_s14 = sphi %s2059_s14, %s2385_s14   ;;  %s2005_s13 = sphi %s2057_s13, %s2384_s13   ;;  %s2001_s12 = sphi %s2055_s12, %s2383_s12  }
   0x6   : > { %s25_s22 = sadd.s32 1, %s2021_s17  ;;  %s28_s23 = sadd.s32 1, %s2025_s18 }
   0x7   : > { %p26_p0 = scmp.ge.s32.totalorder %s25_s22, 2  ;;  %p117_p1 = scmp.ne.s32.totalorder %s2009_s14, %s2005_s13 }
   0x8   : > { %p118_p2 = scmp.eq.s32.totalorder %s1322_s20, 3  ;;  %p123_p5 = scmp.ne.s32.totalorder %s2005_s13, %s2001_s12 }
   0x9   : > { %s2391_s22 = smov (%p26_p0, %s25_s22), 0  ;;  %s2393_s23 = smov (!%p26_p0, %s28_s23), %s2025_s18 }
   0xa   : > { %s103_s24 = ssub.s32 %s2021_s17, %s2391_s22  ;;  %p2106_p3 = por %p118_p2, %p117_p1 }
   0xb   : > { %p30_p4 = scmp.ge.s32.totalorder %s2393_s23, 2  ;;  %p124_p6 = scmp.eq.s32.totalorder %s1323_s21, 3 }
   0xc   : > { %p1326_p7 = scmp.ge.s32.totalorder %s2029_s19, 1  ;;  %p161_p9 = scmp.lt.s32.totalorder %s2029_s19, 5 }
   0xd   : > { %s2395_s23 = smov (%p30_p4, %s2393_s23), 0  ;;  %p2115_p8 = por %p124_p6, %p123_p5 }
   0xe   : > { %s102_s27 = ssub.s32 %s2025_s18, %s2395_s23  ;;  %s107_s28 = sadd.s32 1, %s2009_s14 }
   0xf   : > { %s104_s29 = sor.u32 %s103_s24, %s102_s27  ;;  %p162_p10 = pnand %p1326_p7, %p161_p9 }
  0x10   : > { %p105_p11 = scmp.eq.s32.totalorder %s104_s29, 0  ;;  %s2130_s6 = sshll.u32 (!%p162_p10), %s2013_s15, 6 }
  0x11   : > { %165 = sbr.rel (%p162_p10) target bundleno = 310 (0x136), region = 32  ;;  %p190_p12 = scmp.lt.s32.totalorder (!%p162_p10), %s2017_s16, 1 }
  0x12   : > { %s2124_s30 = scalar_select %p105_p11, %s2009_s14, %s107_s28  }
  0x13   : > { %p192_p13 = scmp.lt.s32.totalorder (!%p162_p10), %s2130_s6, 127  ;;  %s186_s4 = sand.u32 (!%p162_p10), 1, %s2005_s13  }
  0x14   : > { %s1327_s5 = sshll.u32 (!%p162_p10), %s186_s4, 8  ;;  %s1464_s8 = sshll.u32 (!%p162_p10), %s2017_s16, 7 }
  0x15   : > { %s2224_s7 = scalar_lea.vmem (!%p162_p10), [#allocation2], %s1327_s5  ;;  %s2032_s24 = smov (!%p162_p10), [#allocation2]  }
  0x16   : > { %v1903_v0 = vld [vmem:[%s2378_s1 + $0x8] sm:$0x3f]   ;;  %vm544_vm0 = vcmask 1044480   ;;  %vm545_vm1 = vcmask 1045504   ;;  %v2031_v1 = vmov 65535   ;;  %v1904_v5 = vld [vmem:[%s2378_s1] sm:$0xff]  }
  0x17   : > { %v546_v2 = vsel %vm544_vm0, 4294967295, %v2031_v1  ;;  %s191_s9 = scalar_select %p190_p12, %s2017_s16, 1  ;;  %vm447_vm2 = vcmask 220160   ;;  %v2211_v39 = vld [vmem:[%s2379_s2] ss:$0 sm:$0xff] }
  0x18   : > { %v547_v3 = vsel %vm545_vm1, %v546_v2, 0  ;;  %s193_s10 = scalar_select %p192_p13, %s2130_s6, 127 }
  0x19   : > { %v549_v4 = vand.u32 %v1903_v0, %v547_v3  ;;  %s1329_s11 = sshll.u32 %s191_s9, 7  ;;  %s1237_s9 = sadd.s32 %s1464_s8, %s2130_s6 }
  0x1a   : > { %s195_s20 = sadd.s32 %s1329_s11, %s193_s10  ;;  %s1465_s16 = sshll.u32 %s1237_s9, 6 }
  0x1b   : > { %1757 = vmatprep.subr.bf16.mxu0 %v549_v4  ;;  %1825 = vmatprep.subr.bf16.mxu1 %v549_v4  ;;  %s1330_s15 = sshll.u32 %s195_s20, 2  ;;  %s1240_s6 = sshll.u32 %s2224_s7, 4  ;;  %s2319_s6 = int_to_ptr.vmem [resolvable:$true] %s1240_s6 }
  0x1c   : > { %1758 = vmatpush3.bf16.msra.mxu0 %v549_v4  ;;  %1827 = vmatpush3.bf16.msra.mxu1 %v549_v4  ;;  %s2142_s27 = scalar_lea.vmem %s2377_s0, %s1330_s15  ;;  %s2317_s20 = scalar_lea.hbm %s2380_s3, %s1465_s16 }
  0x1d   : > { %1759 = vmatprep.subr.bf16.mxu0 %v1904_v5  ;;  %1826 = vmatprep.subr.bf16.mxu1 %v1904_v5  ;;  %v1905_v6 = vld [vmem:[%s2142_s27] sm:$0xff]   ;;  %v1907_v8 = vld [vmem:[%s2142_s27 + $0x8] sm:$0xff]   ;;  %v1909_v10 = vld [vmem:[%s2142_s27 + $0x10] sm:$0xff]   ;;  %s2326_s15 = scalar_lea.sflag [#allocation3], %s186_s4  ;;  %s1937_s21 = scalar_lea.vmem %s2319_s6, 4096 }
  0x1e   : > { %v1906_v7 = vld [vmem:[%s2142_s27 + $0x80] sm:$0xff]   ;;  %1761 = vmatprep.mubr.msk.bf16.mxu0 %vm447_vm2, %v1905_v6  ;;  %v1908_v9 = vld [vmem:[%s2142_s27 + $0x88] sm:$0xff]   ;;  %v1910_v11 = vld [vmem:[%s2142_s27 + $0x90] sm:$0xff]   ;;  %p1938_p0 = scmp.ne.s32.totalorder %s2319_s6, %s1937_s21 }
  0x1f   : > { %1793 = vmatprep.mubr.msk.bf16.mxu1 %vm447_vm2, %v1906_v7  ;;  %v1911_v12 = vld [vmem:[%s2142_s27 + $0x18] sm:$0xff]   ;;  %v1913_v14 = vld [vmem:[%s2142_s27 + $0x20] sm:$0xff]   ;;  %v1915_v16 = vld [vmem:[%s2142_s27 + $0x28] sm:$0xff]  }
  0x20   : > { %1760 = vmatpush3.bf16.msra.mxu0 %v1904_v5  ;;  %1828 = vmatpush3.bf16.msra.mxu1 %v1904_v5  ;;  %v1912_v13 = vld [vmem:[%s2142_s27 + $0x98] sm:$0xff]   ;;  %v1914_v15 = vld [vmem:[%s2142_s27 + $0xa0] sm:$0xff]   ;;  %v1916_v17 = vld [vmem:[%s2142_s27 + $0xa8] sm:$0xff]   ;;  %p1939_p1 = pnand %p1938_p0, %p2106_p3 }
  0x21   : > { %v1917_v18 = vld [vmem:[%s2142_s27 + $0x30] sm:$0xff]   ;;  %v1919_v20 = vld [vmem:[%s2142_s27 + $0x38] sm:$0xff]   ;;  %v1921_v22 = vld [vmem:[%s2142_s27 + $0x40] sm:$0xff]  }
  0x22   : > { %v1918_v19 = vld [vmem:[%s2142_s27 + $0xb0] sm:$0xff]   ;;  %v1920_v21 = vld [vmem:[%s2142_s27 + $0xb8] sm:$0xff]   ;;  %v1922_v23 = vld [vmem:[%s2142_s27 + $0xc0] sm:$0xff]   ;;  %p1940_p2 = pneg %p1939_p1 }
  0x23   : > { %1762 = vmatmul.mubr.msk.bf16.vlgmr.msra.gmra.mxu0 %vm447_vm2, %v1907_v8  ;;  %1794 = vmatmul.mubr.msk.bf16.vlgmr.msra.gmra.mxu1 %vm447_vm2, %v1908_v9  ;;  %v1923_v24 = vld [vmem:[%s2142_s27 + $0x48] sm:$0xff]   ;;  %v1925_v26 = vld [vmem:[%s2142_s27 + $0x50] sm:$0xff]   ;;  %v1927_v28 = vld [vmem:[%s2142_s27 + $0x58] sm:$0xff]  }
  0x24   : > { %1765 = vmatprep.mubr.msk.bf16.mxu0 %vm447_vm2, %v1909_v10  ;;  %1797 = vmatprep.mubr.msk.bf16.mxu1 %vm447_vm2, %v1910_v11  ;;  %v1924_v25 = vld [vmem:[%s2142_s27 + $0xc8] sm:$0xff]   ;;  %v1926_v27 = vld [vmem:[%s2142_s27 + $0xd0] sm:$0xff]   ;;  %v1928_v29 = vld [vmem:[%s2142_s27 + $0xd8] sm:$0xff]  }
  0x25   : > { %v1929_v30 = vld [vmem:[%s2142_s27 + $0x60] sm:$0xff]   ;;  %v1931_v32 = vld [vmem:[%s2142_s27 + $0x68] sm:$0xff]   ;;  %v1933_v34 = vld [vmem:[%s2142_s27 + $0x70] sm:$0xff]  }
  0x26   : > { %v1930_v31 = vld [vmem:[%s2142_s27 + $0xe0] sm:$0xff]   ;;  %v1932_v33 = vld [vmem:[%s2142_s27 + $0xe8] sm:$0xff]   ;;  %v1934_v35 = vld [vmem:[%s2142_s27 + $0xf0] sm:$0xff]  }
  0x27   : > { %v1935_v36 = vld [vmem:[%s2142_s27 + $0x78] sm:$0xff]  }
  0x28   : > { %v1936_v37 = vld [vmem:[%s2142_s27 + $0xf8] sm:$0xff]   ;;  %s1941_s27 = sshll.u32 %s2032_s24, 4  ;;  %s1942_s27 = int_to_ptr.vmem [resolvable:$false] %s1941_s27 }
  0x29   : > { %s1943_s28 = scalar_lea.vmem %s1942_s27, 8192  ;;  %p1944_p4 = scmp.lt.s32.totalorder %s2319_s6, %s1942_s27 }
  0x2a   : > { %p1945_p5 = scmp.lt.s32.totalorder %s1943_s28, %s1937_s21 }
  0x2b   : > { %1766 = vmatmul.mubr.msk.bf16.gmra.mxu0 %vm447_vm2, %v1911_v12  ;;  %1798 = vmatmul.mubr.msk.bf16.gmra.mxu1 %vm447_vm2, %v1912_v13 }
  0x2c   : > { %1769 = vmatprep.mubr.msk.bf16.mxu0 %vm447_vm2, %v1913_v14  ;;  %1801 = vmatprep.mubr.msk.bf16.mxu1 %vm447_vm2, %v1914_v15  ;;  %p1946_p6 = por %p1945_p5, %p1944_p4 }
  0x2e   : > { %p1947_p7 = pnand %p1946_p6, %p1940_p2 }
  0x33   : > { %1770 = vmatmul.mubr.msk.bf16.gmra.mxu0 %vm447_vm2, %v1915_v16  ;;  %1802 = vmatmul.mubr.msk.bf16.gmra.mxu1 %vm447_vm2, %v1916_v17 }
  0x34   : > { %1773 = vmatprep.mubr.msk.bf16.mxu0 %vm447_vm2, %v1917_v18  ;;  %1805 = vmatprep.mubr.msk.bf16.mxu1 %vm447_vm2, %v1918_v19 }
  0x3b   : > { %1774 = vmatmul.mubr.msk.bf16.gmra.mxu0 %vm447_vm2, %v1919_v20  ;;  %1806 = vmatmul.mubr.msk.bf16.gmra.mxu1 %vm447_vm2, %v1920_v21 }
  0x3c   : > { %1777 = vmatprep.mubr.msk.bf16.mxu0 %vm447_vm2, %v1921_v22  ;;  %1809 = vmatprep.mubr.msk.bf16.mxu1 %vm447_vm2, %v1922_v23 }
  0x43   : > { %1778 = vmatmul.mubr.msk.bf16.gmra.mxu0 %vm447_vm2, %v1923_v24  ;;  %1810 = vmatmul.mubr.msk.bf16.gmra.mxu1 %vm447_vm2, %v1924_v25 }
  0x44   : > { %1781 = vmatprep.mubr.msk.bf16.mxu0 %vm447_vm2, %v1925_v26  ;;  %1813 = vmatprep.mubr.msk.bf16.mxu1 %vm447_vm2, %v1926_v27 }
  0x4b   : > { %1782 = vmatmul.mubr.msk.bf16.gmra.mxu0 %vm447_vm2, %v1927_v28  ;;  %1814 = vmatmul.mubr.msk.bf16.gmra.mxu1 %vm447_vm2, %v1928_v29 }
  0x4c   : > { %1785 = vmatprep.mubr.msk.bf16.mxu0 %vm447_vm2, %v1929_v30  ;;  %1817 = vmatprep.mubr.msk.bf16.mxu1 %vm447_vm2, %v1930_v31 }
  0x53   : > { %1786 = vmatmul.mubr.msk.bf16.gmra.mxu0 %vm447_vm2, %v1931_v32  ;;  %1818 = vmatmul.mubr.msk.bf16.gmra.mxu1 %vm447_vm2, %v1932_v33 }
  0x54   : > { %1789 = vmatprep.mubr.msk.bf16.mxu0 %vm447_vm2, %v1933_v34  ;;  %1821 = vmatprep.mubr.msk.bf16.mxu1 %vm447_vm2, %v1934_v35 }
  0x5b   : > { %1790 = vmatmul.mubr.msk.bf16.gmra.mxu0 %vm447_vm2, %v1935_v36  ;;  %1822 = vmatmul.mubr.msk.bf16.gmra.mxu1 %vm447_vm2, %v1936_v37 }
  0xe3   : > { %v1763_v38 = vpop.f32.mrf.mxu0  ;;  %v1795_v40 = vpop.f32.mrf.mxu1 }
  0xe4   : > { %v594_v42 = vadd.f32 %v1763_v38, %v2211_v39  ;;  %v722_v44 = vadd.f32 %v1795_v40, %v2211_v39 }
  0xe5   : > { %v585_v41 = vpop.f32.mrf.mxu0  ;;  %v713_v43 = vpop.f32.mrf.mxu1 }
  0xe6   : > { %v586_v46 = vadd.f32 %v2211_v39, %v585_v41  ;;  %v714_v49 = vadd.f32 %v2211_v39, %v713_v43  ;;  %v842_v52 = vmax.f32 %v594_v42, 0.0  ;;  %v874_v56 = vmax.f32 %v722_v44, 0.0 }
  0xe7   : > { %v1764_v45 = vpop.f32.mrf.mxu0  ;;  %v1796_v48 = vpop.f32.mrf.mxu1 }
  0xe8   : > { %v597_v47 = vadd.f32 %v1764_v45, %v2211_v39  ;;  %v725_v50 = vadd.f32 %v1796_v48, %v2211_v39  ;;  %v840_v60 = vmax.f32 %v586_v46, 0.0  ;;  %v872_v0 = vmax.f32 %v714_v49, 0.0 }
  0xe9   : > { %v588_v51 = vpop.f32.mrf.mxu0  ;;  %v716_v55 = vpop.f32.mrf.mxu1 }
  0xea   : > { %v843_v53 = vmax.f32 %v597_v47, 0.0  ;;  %v589_v54 = vadd.f32 %v2211_v39, %v588_v51  ;;  %v875_v57 = vmax.f32 %v725_v50, 0.0  ;;  %v717_v58 = vadd.f32 %v2211_v39, %v716_v55 }
  0xeb   : > { %v1767_v59 = vpop.f32.mrf.mxu0  ;;  %v1799_v63 = vpop.f32.mrf.mxu1 }
  0xec   : > { %v1540_v61 = vpack.c.bf16 %v843_v53, %v842_v52  ;;  %v841_v62 = vmax.f32 %v589_v54, 0.0  ;;  %v1620_v1 = vpack.c.bf16 %v875_v57, %v874_v56  ;;  %v873_v2 = vmax.f32 %v717_v58, 0.0 }
  0xed   : > { %v601_v3 = vpop.f32.mrf.mxu0  ;;  %v610_v5 = vadd.f32 %v1767_v59, %v2211_v39  ;;  %v729_v6 = vpop.f32.mrf.mxu1  ;;  %v738_v8 = vadd.f32 %v1799_v63, %v2211_v39 }
  0xee   : > { %1692 = vst [vmem:[%s2224_s7 + $0x8] sm:$0xff] %v1540_v61   ;;  %v1535_v4 = vpack.c.bf16 %v841_v62, %v840_v60  ;;  %1708 = vst [vmem:[%s2224_s7 + $0x88] sm:$0xff] %v1620_v1   ;;  %v1615_v7 = vpack.c.bf16 %v873_v2, %v872_v0  ;;  %v602_v10 = vadd.f32 %v2211_v39, %v601_v3 }
  0xef   : > { %v1768_v9 = vpop.f32.mrf.mxu0  ;;  %v1800_v12 = vpop.f32.mrf.mxu1  ;;  %v730_v13 = vadd.f32 %v2211_v39, %v729_v6  ;;  %v846_v16 = vmax.f32 %v610_v5, 0.0  ;;  %v878_v20 = vmax.f32 %v738_v8, 0.0 }
  0xf0   : > { %1536 = vst [vmem:[%s2224_s7] sm:$0xff] %v1535_v4   ;;  %v613_v11 = vadd.f32 %v1768_v9, %v2211_v39  ;;  %1707 = vst [vmem:[%s2224_s7 + $0x80] sm:$0xff] %v1615_v7   ;;  %v741_v14 = vadd.f32 %v1800_v12, %v2211_v39  ;;  %v844_v24 = vmax.f32 %v602_v10, 0.0 }
  0xf1   : > { %v604_v15 = vpop.f32.mrf.mxu0  ;;  %v732_v19 = vpop.f32.mrf.mxu1  ;;  %v876_v28 = vmax.f32 %v730_v13, 0.0 }
  0xf2   : > { %v847_v17 = vmax.f32 %v613_v11, 0.0  ;;  %v605_v18 = vadd.f32 %v2211_v39, %v604_v15  ;;  %v879_v21 = vmax.f32 %v741_v14, 0.0  ;;  %v733_v22 = vadd.f32 %v2211_v39, %v732_v19 }
  0xf3   : > { %v1771_v23 = vpop.f32.mrf.mxu0  ;;  %v1803_v27 = vpop.f32.mrf.mxu1 }
  0xf4   : > { %v1550_v25 = vpack.c.bf16 %v847_v17, %v846_v16  ;;  %v845_v26 = vmax.f32 %v605_v18, 0.0  ;;  %v1630_v29 = vpack.c.bf16 %v879_v21, %v878_v20  ;;  %v877_v30 = vmax.f32 %v733_v22, 0.0 }
  0xf5   : > { %v617_v31 = vpop.f32.mrf.mxu0  ;;  %v626_v33 = vadd.f32 %v1771_v23, %v2211_v39  ;;  %v745_v34 = vpop.f32.mrf.mxu1  ;;  %v754_v36 = vadd.f32 %v1803_v27, %v2211_v39 }
  0xf6   : > { %1694 = vst [vmem:[%s2224_s7 + $0x18] sm:$0xff] %v1550_v25   ;;  %v1545_v32 = vpack.c.bf16 %v845_v26, %v844_v24  ;;  %1710 = vst [vmem:[%s2224_s7 + $0x98] sm:$0xff] %v1630_v29   ;;  %v1625_v35 = vpack.c.bf16 %v877_v30, %v876_v28  ;;  %v618_v38 = vadd.f32 %v2211_v39, %v617_v31 }
  0xf7   : > { %v1772_v37 = vpop.f32.mrf.mxu0  ;;  %v1804_v41 = vpop.f32.mrf.mxu1  ;;  %v746_v42 = vadd.f32 %v2211_v39, %v745_v34  ;;  %v850_v45 = vmax.f32 %v626_v33, 0.0  ;;  %v882_v49 = vmax.f32 %v754_v36, 0.0 }
  0xf8   : > { %1693 = vst [vmem:[%s2224_s7 + $0x10] sm:$0xff] %v1545_v32   ;;  %v629_v40 = vadd.f32 %v1772_v37, %v2211_v39  ;;  %1709 = vst [vmem:[%s2224_s7 + $0x90] sm:$0xff] %v1625_v35   ;;  %v757_v43 = vadd.f32 %v1804_v41, %v2211_v39  ;;  %v848_v53 = vmax.f32 %v618_v38, 0.0 }
  0xf9   : > { %v620_v44 = vpop.f32.mrf.mxu0  ;;  %v748_v48 = vpop.f32.mrf.mxu1  ;;  %v880_v57 = vmax.f32 %v746_v42, 0.0 }
  0xfa   : > { %v851_v46 = vmax.f32 %v629_v40, 0.0  ;;  %v621_v47 = vadd.f32 %v2211_v39, %v620_v44  ;;  %v883_v50 = vmax.f32 %v757_v43, 0.0  ;;  %v749_v51 = vadd.f32 %v2211_v39, %v748_v48 }
  0xfb   : > { %v1775_v52 = vpop.f32.mrf.mxu0  ;;  %v1807_v56 = vpop.f32.mrf.mxu1 }
  0xfc   : > { %v1560_v54 = vpack.c.bf16 %v851_v46, %v850_v45  ;;  %v849_v55 = vmax.f32 %v621_v47, 0.0  ;;  %v1640_v58 = vpack.c.bf16 %v883_v50, %v882_v49  ;;  %v881_v59 = vmax.f32 %v749_v51, 0.0 }
  0xfd   : > { %v633_v60 = vpop.f32.mrf.mxu0  ;;  %v642_v62 = vadd.f32 %v1775_v52, %v2211_v39  ;;  %v761_v63 = vpop.f32.mrf.mxu1  ;;  %v770_v1 = vadd.f32 %v1807_v56, %v2211_v39 }
  0xfe   : > { %1696 = vst [vmem:[%s2224_s7 + $0x28] sm:$0xff] %v1560_v54   ;;  %v1555_v61 = vpack.c.bf16 %v849_v55, %v848_v53  ;;  %1712 = vst [vmem:[%s2224_s7 + $0xa8] sm:$0xff] %v1640_v58   ;;  %v1635_v0 = vpack.c.bf16 %v881_v59, %v880_v57  ;;  %v634_v3 = vadd.f32 %v2211_v39, %v633_v60 }
  0xff   : > { %v1776_v2 = vpop.f32.mrf.mxu0  ;;  %v1808_v5 = vpop.f32.mrf.mxu1  ;;  %v762_v6 = vadd.f32 %v2211_v39, %v761_v63  ;;  %v854_v9 = vmax.f32 %v642_v62, 0.0  ;;  %v886_v13 = vmax.f32 %v770_v1, 0.0 }
 0x100   : > { %1695 = vst [vmem:[%s2224_s7 + $0x20] sm:$0xff] %v1555_v61   ;;  %v645_v4 = vadd.f32 %v1776_v2, %v2211_v39  ;;  %1711 = vst [vmem:[%s2224_s7 + $0xa0] sm:$0xff] %v1635_v0   ;;  %v773_v7 = vadd.f32 %v1808_v5, %v2211_v39  ;;  %v852_v17 = vmax.f32 %v634_v3, 0.0 }
 0x101   : > { %v636_v8 = vpop.f32.mrf.mxu0  ;;  %v764_v12 = vpop.f32.mrf.mxu1  ;;  %v884_v21 = vmax.f32 %v762_v6, 0.0 }
 0x102   : > { %v855_v10 = vmax.f32 %v645_v4, 0.0  ;;  %v637_v11 = vadd.f32 %v2211_v39, %v636_v8  ;;  %v887_v14 = vmax.f32 %v773_v7, 0.0  ;;  %v765_v15 = vadd.f32 %v2211_v39, %v764_v12 }
 0x103   : > { %v1779_v16 = vpop.f32.mrf.mxu0  ;;  %v1811_v20 = vpop.f32.mrf.mxu1 }
 0x104   : > { %v1570_v18 = vpack.c.bf16 %v855_v10, %v854_v9  ;;  %v853_v19 = vmax.f32 %v637_v11, 0.0  ;;  %v1650_v22 = vpack.c.bf16 %v887_v14, %v886_v13  ;;  %v885_v23 = vmax.f32 %v765_v15, 0.0 }
 0x105   : > { %v649_v24 = vpop.f32.mrf.mxu0  ;;  %v658_v26 = vadd.f32 %v1779_v16, %v2211_v39  ;;  %v777_v27 = vpop.f32.mrf.mxu1  ;;  %v786_v29 = vadd.f32 %v1811_v20, %v2211_v39 }
 0x106   : > { %1698 = vst [vmem:[%s2224_s7 + $0x38] sm:$0xff] %v1570_v18   ;;  %v1565_v25 = vpack.c.bf16 %v853_v19, %v852_v17  ;;  %1714 = vst [vmem:[%s2224_s7 + $0xb8] sm:$0xff] %v1650_v22   ;;  %v1645_v28 = vpack.c.bf16 %v885_v23, %v884_v21  ;;  %v650_v31 = vadd.f32 %v2211_v39, %v649_v24 }
 0x107   : > { %v1780_v30 = vpop.f32.mrf.mxu0  ;;  %v1812_v33 = vpop.f32.mrf.mxu1  ;;  %v778_v34 = vadd.f32 %v2211_v39, %v777_v27  ;;  %v858_v37 = vmax.f32 %v658_v26, 0.0  ;;  %v890_v42 = vmax.f32 %v786_v29, 0.0 }
 0x108   : > { %1697 = vst [vmem:[%s2224_s7 + $0x30] sm:$0xff] %v1565_v25   ;;  %v661_v32 = vadd.f32 %v1780_v30, %v2211_v39  ;;  %1713 = vst [vmem:[%s2224_s7 + $0xb0] sm:$0xff] %v1645_v28   ;;  %v789_v35 = vadd.f32 %v1812_v33, %v2211_v39  ;;  %v856_v46 = vmax.f32 %v650_v31, 0.0 }
 0x109   : > { %v652_v36 = vpop.f32.mrf.mxu0  ;;  %v780_v41 = vpop.f32.mrf.mxu1  ;;  %v888_v50 = vmax.f32 %v778_v34, 0.0 }
 0x10a   : > { %v859_v38 = vmax.f32 %v661_v32, 0.0  ;;  %v653_v40 = vadd.f32 %v2211_v39, %v652_v36  ;;  %v891_v43 = vmax.f32 %v789_v35, 0.0  ;;  %v781_v44 = vadd.f32 %v2211_v39, %v780_v41 }
 0x10b   : > { %v1783_v45 = vpop.f32.mrf.mxu0  ;;  %v1815_v49 = vpop.f32.mrf.mxu1 }
 0x10c   : > { %v1580_v47 = vpack.c.bf16 %v859_v38, %v858_v37  ;;  %v857_v48 = vmax.f32 %v653_v40, 0.0  ;;  %v1660_v51 = vpack.c.bf16 %v891_v43, %v890_v42  ;;  %v889_v52 = vmax.f32 %v781_v44, 0.0 }
 0x10d   : > { %v665_v53 = vpop.f32.mrf.mxu0  ;;  %v674_v55 = vadd.f32 %v1783_v45, %v2211_v39  ;;  %v793_v56 = vpop.f32.mrf.mxu1  ;;  %v802_v58 = vadd.f32 %v1815_v49, %v2211_v39 }
 0x10e   : > { %1700 = vst [vmem:[%s2224_s7 + $0x48] sm:$0xff] %v1580_v47   ;;  %v1575_v54 = vpack.c.bf16 %v857_v48, %v856_v46  ;;  %1716 = vst [vmem:[%s2224_s7 + $0xc8] sm:$0xff] %v1660_v51   ;;  %v1655_v57 = vpack.c.bf16 %v889_v52, %v888_v50  ;;  %v666_v60 = vadd.f32 %v2211_v39, %v665_v53 }
 0x10f   : > { %v1784_v59 = vpop.f32.mrf.mxu0  ;;  %v1816_v62 = vpop.f32.mrf.mxu1  ;;  %v794_v63 = vadd.f32 %v2211_v39, %v793_v56  ;;  %v862_v2 = vmax.f32 %v674_v55, 0.0  ;;  %v894_v6 = vmax.f32 %v802_v58, 0.0 }
 0x110   : > { %1699 = vst [vmem:[%s2224_s7 + $0x40] sm:$0xff] %v1575_v54   ;;  %v677_v61 = vadd.f32 %v1784_v59, %v2211_v39  ;;  %1715 = vst [vmem:[%s2224_s7 + $0xc0] sm:$0xff] %v1655_v57   ;;  %v805_v0 = vadd.f32 %v1816_v62, %v2211_v39  ;;  %v860_v10 = vmax.f32 %v666_v60, 0.0 }
 0x111   : > { %v668_v1 = vpop.f32.mrf.mxu0  ;;  %v796_v5 = vpop.f32.mrf.mxu1  ;;  %v892_v14 = vmax.f32 %v794_v63, 0.0 }
 0x112   : > { %v863_v3 = vmax.f32 %v677_v61, 0.0  ;;  %v669_v4 = vadd.f32 %v2211_v39, %v668_v1  ;;  %v895_v7 = vmax.f32 %v805_v0, 0.0  ;;  %v797_v8 = vadd.f32 %v2211_v39, %v796_v5 }
 0x113   : > { %v1787_v9 = vpop.f32.mrf.mxu0  ;;  %v1819_v13 = vpop.f32.mrf.mxu1 }
 0x114   : > { %v1590_v11 = vpack.c.bf16 %v863_v3, %v862_v2  ;;  %v861_v12 = vmax.f32 %v669_v4, 0.0  ;;  %v1670_v15 = vpack.c.bf16 %v895_v7, %v894_v6  ;;  %v893_v16 = vmax.f32 %v797_v8, 0.0 }
 0x115   : > { %v681_v17 = vpop.f32.mrf.mxu0  ;;  %v690_v19 = vadd.f32 %v1787_v9, %v2211_v39  ;;  %v809_v20 = vpop.f32.mrf.mxu1  ;;  %v818_v22 = vadd.f32 %v1819_v13, %v2211_v39 }
 0x116   : > { %1702 = vst [vmem:[%s2224_s7 + $0x58] sm:$0xff] %v1590_v11   ;;  %v1585_v18 = vpack.c.bf16 %v861_v12, %v860_v10  ;;  %1718 = vst [vmem:[%s2224_s7 + $0xd8] sm:$0xff] %v1670_v15   ;;  %v1665_v21 = vpack.c.bf16 %v893_v16, %v892_v14  ;;  %v682_v24 = vadd.f32 %v2211_v39, %v681_v17 }
 0x117   : > { %v1788_v23 = vpop.f32.mrf.mxu0  ;;  %v1820_v26 = vpop.f32.mrf.mxu1  ;;  %v810_v27 = vadd.f32 %v2211_v39, %v809_v20  ;;  %v866_v30 = vmax.f32 %v690_v19, 0.0  ;;  %v898_v34 = vmax.f32 %v818_v22, 0.0 }
 0x118   : > { %1701 = vst [vmem:[%s2224_s7 + $0x50] sm:$0xff] %v1585_v18   ;;  %v693_v25 = vadd.f32 %v1788_v23, %v2211_v39  ;;  %1717 = vst [vmem:[%s2224_s7 + $0xd0] sm:$0xff] %v1665_v21   ;;  %v821_v28 = vadd.f32 %v1820_v26, %v2211_v39  ;;  %v864_v38 = vmax.f32 %v682_v24, 0.0 }
 0x119   : > { %v684_v29 = vpop.f32.mrf.mxu0  ;;  %v812_v33 = vpop.f32.mrf.mxu1  ;;  %v896_v43 = vmax.f32 %v810_v27, 0.0 }
 0x11a   : > { %v867_v31 = vmax.f32 %v693_v25, 0.0  ;;  %v685_v32 = vadd.f32 %v2211_v39, %v684_v29  ;;  %v899_v35 = vmax.f32 %v821_v28, 0.0  ;;  %v813_v36 = vadd.f32 %v2211_v39, %v812_v33 }
 0x11b   : > { %v1791_v37 = vpop.f32.mrf.mxu0  ;;  %v1823_v42 = vpop.f32.mrf.mxu1 }
 0x11c   : > { %v1600_v40 = vpack.c.bf16 %v867_v31, %v866_v30  ;;  %v865_v41 = vmax.f32 %v685_v32, 0.0  ;;  %v1680_v44 = vpack.c.bf16 %v899_v35, %v898_v34  ;;  %v897_v45 = vmax.f32 %v813_v36, 0.0 }
 0x11d   : > { %v697_v46 = vpop.f32.mrf.mxu0  ;;  %v706_v48 = vadd.f32 %v1791_v37, %v2211_v39  ;;  %v825_v49 = vpop.f32.mrf.mxu1  ;;  %v834_v51 = vadd.f32 %v1823_v42, %v2211_v39 }
 0x11e   : > { %1704 = vst [vmem:[%s2224_s7 + $0x68] sm:$0xff] %v1600_v40   ;;  %v1595_v47 = vpack.c.bf16 %v865_v41, %v864_v38  ;;  %1720 = vst [vmem:[%s2224_s7 + $0xe8] sm:$0xff] %v1680_v44   ;;  %v1675_v50 = vpack.c.bf16 %v897_v45, %v896_v43  ;;  %v698_v53 = vadd.f32 %v2211_v39, %v697_v46 }
 0x11f   : > { %v1792_v52 = vpop.f32.mrf.mxu0  ;;  %v1824_v55 = vpop.f32.mrf.mxu1  ;;  %v826_v56 = vadd.f32 %v2211_v39, %v825_v49  ;;  %v870_v59 = vmax.f32 %v706_v48, 0.0  ;;  %v902_v63 = vmax.f32 %v834_v51, 0.0 }
 0x120   : > { %1703 = vst [vmem:[%s2224_s7 + $0x60] sm:$0xff] %v1595_v47   ;;  %v709_v54 = vadd.f32 %v1792_v52, %v2211_v39  ;;  %1719 = vst [vmem:[%s2224_s7 + $0xe0] sm:$0xff] %v1675_v50   ;;  %v837_v57 = vadd.f32 %v1824_v55, %v2211_v39  ;;  %v868_v2 = vmax.f32 %v698_v53, 0.0 }
 0x121   : > { %v700_v58 = vpop.f32.mrf.mxu0  ;;  %v828_v62 = vpop.f32.mrf.mxu1  ;;  %v900_v5 = vmax.f32 %v826_v56, 0.0 }
 0x122   : > { %v871_v60 = vmax.f32 %v709_v54, 0.0  ;;  %v701_v61 = vadd.f32 %v2211_v39, %v700_v58  ;;  %v903_v0 = vmax.f32 %v837_v57, 0.0  ;;  %v829_v1 = vadd.f32 %v2211_v39, %v828_v62 }
 0x124   : > { %v1610_v3 = vpack.c.bf16 %v871_v60, %v870_v59  ;;  %v869_v4 = vmax.f32 %v701_v61, 0.0  ;;  %v1690_v6 = vpack.c.bf16 %v903_v0, %v902_v63  ;;  %v901_v7 = vmax.f32 %v829_v1, 0.0 }
 0x126   : > { %1706 = vst [vmem:[%s2224_s7 + $0x78] sm:$0xff] %v1610_v3   ;;  %v1605_v8 = vpack.c.bf16 %v869_v4, %v868_v2  ;;  %1722 = vst [vmem:[%s2224_s7 + $0xf8] sm:$0xff] %v1690_v6   ;;  %v1685_v39 = vpack.c.bf16 %v901_v7, %v900_v5 }
 0x128   : > { %1705 = vst [vmem:[%s2224_s7 + $0x70] sm:$0xff] %v1605_v8   ;;  %1721 = vst [vmem:[%s2224_s7 + $0xf0] sm:$0xff] %v1685_v39  }
 0x129   : > { %1950 = shalt.err (!%p1947_p7)
}
 0x12a   : > { %s1951_s29 = scalar_lea.hbm %s2317_s20, 4096  ;;  %s1955_s7 = scalar_lea.hbm %s2380_s3, 16384 }
 0x12b   : > { %p1952_p9 = scmp.ne.s32.totalorder %s2317_s20, %s1951_s29  ;;  %p1956_p12 = scmp.lt.s32.totalorder %s2317_s20, %s2380_s3 }
 0x12c   : > { %p1957_p13 = scmp.lt.s32.totalorder %s1955_s7, %s1951_s29 }
 0x12d   : > { %p1953_p10 = pnand %p1952_p9, %p2106_p3 }
 0x12e   : > { %p1958_p0 = por %p1957_p13, %p1956_p12 }
 0x12f   : > { %p1954_p11 = pneg %p1953_p10 }
 0x131   : > { %p1959_p1 = pnand %p1958_p0, %p1954_p11 }
 0x133   : > { %1962 = shalt.err (!%p1959_p1)
}
 0x134   : > { %s2033_s16 = smov 64   ;;  %s2034_s10 = smov 4  }
 0x135   : > { %1829 = dma.vmem_to_hbm [thread:$0]  (%p2106_p3), %s2319_s6, 4096, %s2317_s20, %s2326_s15, %s2033_s16, %s2033_s16, %s2034_s10  }
 0x136 PF: > { %p1835_p2 = scmp.ge.s32.totalorder %s2029_s19, 2  ;;  %s1255_s11 = sand.u32 1, %s2001_s12  }
 0x137   : > { %s1256_s21 = scalar_lea.sflag [#allocation3], %s1255_s11 }
 0x138   : > { %p1832_p4 = pnand %p1835_p2, %p2115_p8 }
 0x13a   : > { %p1833_p5 = pneg %p1832_p4 }
 0x13c   : > { %1996 = dma.done.wait (%p1833_p5), %s1256_s21, 4096  }
 0x13d   : > { %1998 = vsyncadd (%p1833_p5), %s1256_s21, 4294963200  ;;  %s16_s19 = sadd.s32 1, %s2029_s19   ;;  %s2383_s12 = smov %s2005_s13 }
 0x13e   : > { %p13_p6 = scmp.ge.s32.totalorder %s16_s19, 6   ;;  %s2384_s13 = smov %s2009_s14 }
 0x13f   : > { %s2385_s14 = smov %s2124_s30  ;;  %s2386_s15 = smov %s2021_s17 }
 0x140   : > { %s2387_s16 = smov %s2025_s18  ;;  %s2388_s17 = smov %s2391_s22 }
 0x141   : > { %s2389_s18 = smov %s2395_s23  ;;  %15 = sbr.rel (!%p13_p6) target bundleno = 5 (0x5), region = 67 }
 0x146   :  { %1261 = vsyncpa [#allocation3], 1 }
 0x147   :  { %1263 = vsyncpa [#allocation3 + $0x1], 1 }

</bundles_post_ra>
